<compile_context>
chip_gen: v5e
topology: v5e:2x2
jax: 0.10.0
libtpu: 0.0.40
codegen_flags: <defaults>
</compile_context>

<pallas_src>
import functools

import jax
import jax.numpy as jnp
from jax import lax
from jax.experimental import pallas as pl
from jax.experimental.pallas import tpu as pltpu


def _round_up(x, m):
    return (x + m - 1) // m * m


# --------------------------------------------------------------------------
# Kernel A: conv (im2col, one MXU dot per tile) + partial BN statistics.
# --------------------------------------------------------------------------
def _conv_stats_kernel(x_ref, w_ref, y_ref, stats_ref, *,
                       tile_l, k, stride, dilation):
    # x_ref:     (1, L_pad, C_in)    padded input, full length for this batch
    # w_ref:     (K*C_in, C_pad)     im2col-folded, C_out zero-padded weights
    # y_ref:     (1, tile_l, C_pad)  bias-free conv output tile
    # stats_ref: (1, 1, 8, C_pad)    rows 0/1 = partial sum / sum of squares
    ti = pl.program_id(1)
    base = pl.multiple_of(ti * (tile_l * stride), tile_l * stride)

    parts = []
    for t in range(k):
        start = base + t * dilation
        if stride == 1:
            xs = x_ref[0, pl.ds(start, tile_l), :]            # (tile_l, C_in)
        else:
            xs = x_ref[0, pl.ds(start, tile_l, stride), :]    # (tile_l, C_in)
        parts.append(xs)
    im2col = jnp.concatenate(parts, axis=-1) if k > 1 else parts[0]

    y = jnp.dot(im2col, w_ref[...], preferred_element_type=jnp.float32)
    y_ref[0, :, :] = y

    # Per-channel partial statistics for BatchNorm (rows beyond l_out in the
    # last tile are exactly zero by construction, so they contribute nothing).
    s1 = jnp.sum(y, axis=0, keepdims=True)        # (1, C_pad)
    s2 = jnp.sum(y * y, axis=0, keepdims=True)    # (1, C_pad)
    pad = jnp.zeros((6, y.shape[1]), jnp.float32)
    stats_ref[0, 0, :, :] = jnp.concatenate([s1, s2, pad], axis=0)


# --------------------------------------------------------------------------
# Kernel B: fused per-channel scale/shift (BN + affine + folded bias) + GELU.
# --------------------------------------------------------------------------
def _bn_gelu_kernel(y_ref, ss_ref, o_ref):
    # y_ref:  (1, tile_l, C_pad)
    # ss_ref: (8, C_pad)   row 0 = scale, row 1 = shift
    y = y_ref[0, :, :]
    scale = ss_ref[0:1, :]
    shift = ss_ref[1:2, :]
    z = y * scale + shift
    o_ref[0, :, :] = jax.nn.gelu(z, approximate=False)   # exact erf GELU


# --------------------------------------------------------------------------
# Wrapper: PyTorch NCL in / NCL out.
# --------------------------------------------------------------------------
def conv_block(x, weight, bias, gamma, beta, *,
               stride=1, padding=None, dilation=1, eps=1e-5):
    """x: (N, C_in, L) float32. Returns (N, C_out, L_out)."""
    del bias  # cancels exactly under training-mode BatchNorm (see header).
    n, c_in, l_in = x.shape
    c_out, c_in_w, k = weight.shape
    assert c_in_w == c_in
    if padding is None:
        padding = (k - 1) // 2
    l_out = (l_in + 2 * padding - dilation * (k - 1) - 1) // stride + 1
    assert l_out > 0

    c_pad = _round_up(c_out, 128)                    # lane-dense output
    tile_l = min(_round_up(l_out, 8), 512)           # VMEM-friendly row tile
    l_out_pad = _round_up(l_out, tile_l)
    num_l_tiles = l_out_pad // tile_l

    # NCL -> channels-last, fused transpose+pad (single HBM rewrite). Right
    # padding also covers the rows of the (possibly partial) last L tile so
    # those rows compute to exactly 0 and keep the BN partial sums exact.
    needed = (l_out_pad - 1) * stride + (k - 1) * dilation + 1
    l_pad_total = max(l_in + 2 * padding, padding + needed)
    right = l_pad_total - l_in - padding
    x_nlc = jnp.pad(jnp.transpose(x, (0, 2, 1)).astype(jnp.float32),
                    ((0, 0), (padding, right), (0, 0)))   # (N, L_pad, C_in)

    # (C_out, C_in, K) -> (K*C_in, C_pad) in im2col (tap-major) order.
    w2d = jnp.transpose(weight, (2, 1, 0)).astype(jnp.float32).reshape(k * c_in, c_out)
    w2d = jnp.pad(w2d, ((0, 0), (0, c_pad - c_out)))

    dim_sem = pltpu.CompilerParams(dimension_semantics=("parallel", "parallel"))

    # ---------------- pass 1: conv + partial BN stats -----------------------
    conv_out, stats = pl.pallas_call(
        functools.partial(_conv_stats_kernel, tile_l=tile_l, k=k,
                          stride=stride, dilation=dilation),
        grid=(n, num_l_tiles),
        in_specs=[
            pl.BlockSpec((1, l_pad_total, c_in), lambda nb, ti: (nb, 0, 0)),
            pl.BlockSpec((k * c_in, c_pad), lambda nb, ti: (0, 0)),
        ],
        out_specs=(
            pl.BlockSpec((1, tile_l, c_pad), lambda nb, ti: (nb, ti, 0)),
            pl.BlockSpec((1, 1, 8, c_pad), lambda nb, ti: (nb, ti, 0, 0)),
        ),
        out_shape=(
            jax.ShapeDtypeStruct((n, l_out_pad, c_pad), jnp.float32),
            jax.ShapeDtypeStruct((n, num_l_tiles, 8, c_pad), jnp.float32),
        ),
        compiler_params=dim_sem,
        cost_estimate=pl.CostEstimate(
            flops=2 * n * l_out_pad * k * c_in * c_pad,
            transcendentals=0,
            bytes_accessed=4 * (x_nlc.size + w2d.size
                                + n * l_out_pad * c_pad
                                + n * num_l_tiles * 8 * c_pad)),
    )(x_nlc, w2d)

    # ---------------- tiny finalize: fold BN into scale/shift ---------------
    count = float(n * l_out)
    sums = jnp.sum(stats, axis=(0, 1))                         # (8, C_pad)
    mean = sums[0] / count
    # Biased variance (matches nn.BatchNorm1d normalization in train()).
    var = jnp.maximum(sums[1] / count - mean * mean, 0.0)
    gamma_p = jnp.pad(gamma.astype(jnp.float32), (0, c_pad - c_out))
    beta_p = jnp.pad(beta.astype(jnp.float32), (0, c_pad - c_out))
    scale = gamma_p * lax.rsqrt(var + eps)
    shift = beta_p - mean * scale
    ss = jnp.concatenate(
        [scale[None], shift[None], jnp.zeros((6, c_pad), jnp.float32)], axis=0)

    # ---------------- pass 2: fused scale/shift + exact GELU ----------------
    out_pad = pl.pallas_call(
        _bn_gelu_kernel,
        grid=(n, num_l_tiles),
        in_specs=[
            pl.BlockSpec((1, tile_l, c_pad), lambda nb, ti: (nb, ti, 0)),
            pl.BlockSpec((8, c_pad), lambda nb, ti: (0, 0)),
        ],
        out_specs=pl.BlockSpec((1, tile_l, c_pad), lambda nb, ti: (nb, ti, 0)),
        out_shape=jax.ShapeDtypeStruct((n, l_out_pad, c_pad), jnp.float32),
        compiler_params=dim_sem,
        cost_estimate=pl.CostEstimate(
            flops=2 * n * l_out_pad * c_pad,
            transcendentals=n * l_out_pad * c_pad,
            bytes_accessed=4 * (2 * n * l_out_pad * c_pad + 8 * c_pad)),
    )(conv_out, ss)

    # Back to PyTorch layout, dropping lane/row padding.
    return jnp.transpose(out_pad[:, :l_out, :c_out], (0, 2, 1))


# --------------------------------------------------------------------------
# Pure-JAX reference (matches the PyTorch module in training mode).
# --------------------------------------------------------------------------
def _reference(x, weight, bias, gamma, beta, *,
               stride=1, padding=None, dilation=1, eps=1e-5):
    c_out, _, k = weight.shape
    if padding is None:
        padding = (k - 1) // 2
    y = lax.conv_general_dilated(
        x, weight, window_strides=(stride,), padding=[(padding, padding)],
        rhs_dilation=(dilation,), dimension_numbers=("NCH", "OIH", "NCH"))
    y = y + bias[None, :, None]
    mean = jnp.mean(y, axis=(0, 2), keepdims=True)
    var = jnp.mean((y - mean) ** 2, axis=(0, 2), keepdims=True)
    y = (y - mean) * lax.rsqrt(var + eps)
    y = y * gamma[None, :, None] + beta[None, :, None]
    return jax.nn.gelu(y, approximate=False)


if __name__ == "__main__":
    key = jax.random.PRNGKey(0)
    k1, k2, k3, k4, k5 = jax.random.split(key, 5)

    N, C_IN, L = 2, 4, 16
    C_OUT, K = 8, 3

    x = jax.random.normal(k1, (N, C_IN, L), jnp.float32)
    weight = 0.1 * jax.random.normal(k2, (C_OUT, C_IN, K), jnp.float32)
    bias = 0.1 * jax.random.normal(k3, (C_OUT,), jnp.float32)
    gamma = 1.0 + 0.1 * jax.random.normal(k4, (C_OUT,), jnp.float32)
    beta = 0.1 * jax.random.normal(k5, (C_OUT,), jnp.float32)

    out = conv_block(x, weight, bias, gamma, beta)
    jax.block_until_ready(out)
    assert out.shape == (N, C_OUT, L), out.shape

    ref = _reference(x, weight, bias, gamma, beta)
    jax.block_until_ready(ref)
    assert jnp.allclose(out, ref, atol=5e-3, rtol=5e-3), float(
        jnp.max(jnp.abs(out - ref)))

    print("KERNEL_OK")
</pallas_src>

<mosaic_0001>
module attributes {stable_mosaic.version = 11 : i64} {
  func.func @_conv_stats_kernel(%arg0: i32, %arg1: i32, %arg2: memref<1x19x4xf32, #tpu.memory_space<vmem>>, %arg3: memref<12x128xf32, #tpu.memory_space<vmem>>, %arg4: memref<1x16x128xf32, #tpu.memory_space<vmem>>, %arg5: memref<1x1x8x128xf32, #tpu.memory_space<vmem>>) attributes {dimension_semantics = [#tpu.dimension_semantics<parallel>, #tpu.dimension_semantics<parallel>], iteration_bounds = array<i64: 2, 1>, scalar_prefetch = 0 : i64, scratch_operands = 0 : i64, tpu.core_type = #tpu.core_type<tc>, window_params = [{transform_indices = @transform_0, window_bounds = array<i64: 1, 19, 4>}, {pipeline_mode = #tpu.pipeline_mode<synchronous>, transform_indices = @transform_1, window_bounds = array<i64: 12, 128>}, {transform_indices = @transform_2, window_bounds = array<i64: 1, 16, 128>}, {transform_indices = @transform_3, window_bounds = array<i64: 1, 1, 8, 128>}]} {
    %c16_i32 = arith.constant 16 : i32
    %0 = arith.muli %arg1, %c16_i32 : i32
    %1 = tpu.assume_multiple %0, 16 : i32
    %c0_i32 = arith.constant 0 : i32
    %2 = arith.addi %1, %c0_i32 : i32
    %c0 = arith.constant 0 : index
    %3 = arith.index_cast %2 : i32 to index
    %c0_0 = arith.constant 0 : index
    %4 = vector.load %arg2[%c0, %3, %c0_0] : memref<1x19x4xf32, #tpu.memory_space<vmem>>, vector<1x16x4xf32>
    %5 = vector.shape_cast %4 : vector<1x16x4xf32> to vector<16x4xf32>
    %c1_i32 = arith.constant 1 : i32
    %6 = arith.addi %1, %c1_i32 : i32
    %c0_1 = arith.constant 0 : index
    %7 = arith.index_cast %6 : i32 to index
    %c0_2 = arith.constant 0 : index
    %8 = vector.load %arg2[%c0_1, %7, %c0_2] : memref<1x19x4xf32, #tpu.memory_space<vmem>>, vector<1x16x4xf32>
    %9 = vector.shape_cast %8 : vector<1x16x4xf32> to vector<16x4xf32>
    %c2_i32 = arith.constant 2 : i32
    %10 = arith.addi %1, %c2_i32 : i32
    %c0_3 = arith.constant 0 : index
    %11 = arith.index_cast %10 : i32 to index
    %c0_4 = arith.constant 0 : index
    %12 = vector.load %arg2[%c0_3, %11, %c0_4] : memref<1x19x4xf32, #tpu.memory_space<vmem>>, vector<1x16x4xf32>
    %13 = vector.shape_cast %12 : vector<1x16x4xf32> to vector<16x4xf32>
    %14 = tpu.concatenate %5, %9, %13 in 1 : vector<16x4xf32>, vector<16x4xf32>, vector<16x4xf32> -> vector<16x12xf32>
    %c0_5 = arith.constant 0 : index
    %c0_6 = arith.constant 0 : index
    %15 = vector.load %arg3[%c0_5, %c0_6] : memref<12x128xf32, #tpu.memory_space<vmem>>, vector<12x128xf32>
    %cst = arith.constant dense<0.000000e+00> : vector<16x128xf32>
    %16 = tpu.matmul %14, %15, %cst {dimension_numbers = #tpu.dot_dimension_numbers<[1], [0], [0], [1], [0, 0, 1, 1], [], []>} : vector<16x12xf32>, vector<12x128xf32>, vector<16x128xf32> -> vector<16x128xf32>
    %c0_7 = arith.constant 0 : index
    %c0_8 = arith.constant 0 : index
    %c0_9 = arith.constant 0 : index
    %17 = vector.load %arg4[%c0_7, %c0_8, %c0_9] : memref<1x16x128xf32, #tpu.memory_space<vmem>>, vector<1x16x128xf32>
    %18 = vector.shape_cast %17 : vector<1x16x128xf32> to vector<16x128xf32>
    %19 = vector.shape_cast %16 : vector<16x128xf32> to vector<1x16x128xf32>
    tpu.vector_store %arg4[%c0_7, %c0_8, %c0_9], %19 {strides = array<i32>} : memref<1x16x128xf32, #tpu.memory_space<vmem>>, vector<1x16x128xf32>,
    %cst_10 = arith.constant dense<0.000000e+00> : vector<128xf32>
    %20 = vector.multi_reduction <add>, %16, %cst_10 [0] : vector<16x128xf32> to vector<128xf32>
    %21 = vector.shape_cast %20 : vector<128xf32> to vector<1x128xf32>
    %22 = arith.mulf %16, %16 : vector<16x128xf32>
    %cst_11 = arith.constant dense<0.000000e+00> : vector<128xf32>
    %23 = vector.multi_reduction <add>, %22, %cst_11 [0] : vector<16x128xf32> to vector<128xf32>
    %24 = vector.shape_cast %23 : vector<128xf32> to vector<1x128xf32>
    %cst_12 = arith.constant 0.000000e+00 : f32
    %25 = vector.broadcast %cst_12 : f32 to vector<6x128xf32>
    %26 = tpu.concatenate %21, %24, %25 in 0 : vector<1x128xf32>, vector<1x128xf32>, vector<6x128xf32> -> vector<8x128xf32>
    %c0_13 = arith.constant 0 : index
    %c0_14 = arith.constant 0 : index
    %c0_15 = arith.constant 0 : index
    %c0_16 = arith.constant 0 : index
    %27 = vector.load %arg5[%c0_13, %c0_14, %c0_15, %c0_16] : memref<1x1x8x128xf32, #tpu.memory_space<vmem>>, vector<1x1x8x128xf32>
    %28 = vector.shape_cast %27 : vector<1x1x8x128xf32> to vector<8x128xf32>
    %29 = vector.shape_cast %26 : vector<8x128xf32> to vector<1x1x8x128xf32>
    tpu.vector_store %arg5[%c0_13, %c0_14, %c0_15, %c0_16], %29 {strides = array<i32>} : memref<1x1x8x128xf32, #tpu.memory_space<vmem>>, vector<1x1x8x128xf32>,
    return
  }
  func.func @transform_0(%arg0: i32, %arg1: i32) -> (i32, i32, i32) {
    %c0_i32 = arith.constant 0 : i32
    %c0_i32_0 = arith.constant 0 : i32
    %c0_i32_1 = arith.constant 0 : i32
    return %arg0, %c0_i32, %c0_i32_0 : i32, i32, i32
  }
  func.func @transform_1(%arg0: i32, %arg1: i32) -> (i32, i32) {
    %c0_i32 = arith.constant 0 : i32
    %c0_i32_0 = arith.constant 0 : i32
    %c0_i32_1 = arith.constant 0 : i32
    return %c0_i32, %c0_i32_0 : i32, i32
  }
  func.func @transform_2(%arg0: i32, %arg1: i32) -> (i32, i32, i32) {
    %c0_i32 = arith.constant 0 : i32
    %c0_i32_0 = arith.constant 0 : i32
    return %arg0, %arg1, %c0_i32 : i32, i32, i32
  }
  func.func @transform_3(%arg0: i32, %arg1: i32) -> (i32, i32, i32, i32) {
    %c0_i32 = arith.constant 0 : i32
    %c0_i32_0 = arith.constant 0 : i32
    %c0_i32_1 = arith.constant 0 : i32
    return %arg0, %arg1, %c0_i32, %c0_i32_0 : i32, i32, i32, i32
  }
}

</mosaic_0001>

<bundles_post_ra>
// kernel: tpu_custom_call.1
= control target key start
LH: loop header
LB: loop body
LE: loop exit
PB: predicated region body
PF: predicated region fallthrough
CT: control target
= control target key end

     0   :  { %9 = vsyncpa [#allocation3], 0  ;;  %s793_s0 = inlined_call_operand.vmem [shape: f32[2,19,4], index: 0, kind: input, shape index: {}]   ;;  %s794_s1 = inlined_call_operand.vmem [shape: f32[12,128], index: 1, kind: input, shape index: {}]   ;;  %s795_s2 = inlined_call_operand.hbm [shape: f32[2,16,128], index: 2, kind: output, shape index: {0}]   ;;  %s796_s3 = inlined_call_operand.hbm [shape: f32[2,1,8,128], index: 3, kind: output, shape index: {1}]  }
   0x1   :  { %11 = vsyncpa [#allocation3 + $0x1], 0 }
   0x2   :  { %12 = vsyncpa [#allocation5], 0 }
   0x3   :  { %14 = vsyncpa [#allocation5 + $0x1], 0  ;;  %s667_s12 = smov 0   ;;  %s669_s13 = smov 0  }
   0x4   :  { %s671_s14 = smov 0   ;;  %s673_s15 = smov 0  }
   0x5   :  { %s675_s16 = smov 0   ;;  %s677_s17 = smov 0  }
   0x6 LB: > { %s443_s18 = sadd.s32 4294967295, %s642_s17   ;;  %s444_s19 = sadd.s32 4294967294, %s642_s17   ;;  %s642_s17 = sphi %s677_s17, %s20_s17   ;;  %s638_s16 = sphi %s675_s16, %s803_s16   ;;  %s634_s15 = sphi %s673_s15, %s802_s15   ;;  %s630_s14 = sphi %s671_s14, %s801_s14   ;;  %s626_s13 = sphi %s669_s13, %s800_s13   ;;  %s622_s12 = sphi %s667_s12, %s799_s12  }
   0x7   : > { %s32_s20 = sadd.s32 1, %s638_s16  ;;  %s88_s21 = sadd.s32 1, %s630_s14 }
   0x8   : > { %p34_p0 = scmp.ge.s32.totalorder %s32_s20, 2  ;;  %p98_p1 = scmp.ne.s32.totalorder %s630_s14, %s626_s13 }
   0x9   : > { %p99_p2 = scmp.eq.s32.totalorder %s443_s18, 1  ;;  %p104_p3 = scmp.ne.s32.totalorder %s626_s13, %s622_s12 }
   0xa   : > { %s805_s20 = smov (%p34_p0, %s32_s20), 0  ;;  %p105_p5 = scmp.eq.s32.totalorder %s444_s19, 1 }
   0xb   : > { %p707_p4 = por %p99_p2, %p98_p1  ;;  %s83_s23 = ssub.s32 %s638_s16, %s805_s20 }
   0xc   : > { %p447_p6 = scmp.ge.s32.totalorder %s642_s17, 1  ;;  %p86_p7 = scmp.eq.s32.totalorder %s83_s23, 0 }
   0xd   : > { %p714_p8 = por %p105_p5, %p104_p3  ;;  %p162_p9 = scmp.lt.s32.totalorder %s642_s17, 3 }
   0xe   : > { %s720_s25 = scalar_select %p86_p7, %s630_s14, %s88_s21  }
   0xf   : > { %p163_p10 = pnand %p447_p6, %p162_p9 }
  0x10   : > { %p191_p11 = scmp.lt.s32.totalorder (!%p163_p10), %s634_s15, 1  ;;  %s644_s6 = smov (!%p163_p10), 4  }
  0x11   : > { %166 = sbr.rel (%p163_p10) target bundleno = 300 (0x12c), region = 28  ;;  %s645_s7 = smov (!%p163_p10), 8  }
  0x12   : > { %s736_s10 = sand.u32 (!%p163_p10), 1, %s626_s13   ;;  %s465_s18 = sshll.u32 (!%p163_p10), %s634_s15, 4 }
  0x13   : > { %s448_s11 = sshll.u32 (!%p163_p10), %s736_s10, 4  ;;  %s309_s26 = scalar_lea.hbm (!%p163_p10), %s795_s2, %s465_s18 }
  0x14   : > { %s183_s19 = scalar_lea.vmem (!%p163_p10), [#allocation2], %s448_s11  ;;  %s552_s8 = scalar_lea.hbm (!%p163_p10), %s795_s2, 32 }
  0x15   : > { %s310_s27 = sshll.u32 (!%p163_p10), %s183_s19, 4  ;;  %s311_s27 = int_to_ptr.vmem [resolvable:$true] %s310_s27 }
  0x16   : > { %v232_v0 = vld [vmem:[%s794_s1 + $0x8] sm:$0xf]  ;;  %vm240_vm0 = vcmask 1043456   ;;  %s192_s28 = scalar_select %p191_p11, %s634_s15, 1  ;;  %v231_v5 = vld [vmem:[%s794_s1] sm:$0xff]  ;;  %vm225_vm1 = vcmask 31744  }
  0x17   : > { %455 = vmatpush.msk.msra.mxu0 %vm240_vm0, %v232_v0  ;;  %466 = vmatpush.msk.msra.mxu1 %vm240_vm0, %v232_v0  ;;  %vm228_vm2 = vcmask 64512   ;;  %vm233_vm3 = vcmask 97280  }
  0x18   : > { %s468_s29 = smul.u32 24, %s192_s28  ;;  %s312_s28 = sshll.u32 %s309_s26, 4  ;;  %s313_s28 = int_to_ptr.hbm [resolvable:$true] %s312_s28 }
  0x19   : > { %259 = vmatpush.msra.mxu0 %v231_v5  ;;  %467 = vmatpush.msra.mxu1 %v231_v5  ;;  %s546_s30 = sshra.s32 %s313_s28, 4  ;;  %s547_s30 = int_to_ptr.hbm [resolvable:$true] %s546_s30 }
  0x1a   : > { %s195_s5 = scalar_lea.vmem %s793_s0, %s468_s29  ;;  %s291_s29 = scalar_lea.sflag [#allocation3], %s736_s10 }
  0x1b   : > { %v451_v1 = vld [vmem:[%s195_s5 + $0x1] sm:$0xff]  ;;  %v452_v3 = vld [vmem:[%s195_s5 + $0x9] sm:$0xff]  ;;  %s548_s4 = scalar_lea.hbm %s547_s30, 16  ;;  %p553_p1 = scmp.lt.s32.totalorder %s547_s30, %s795_s2 }
  0x1c   : > { %v453_v2 = vld [vmem:[%s195_s5 + $0x2] sm:$0xff]  ;;  %211 = vrot.lane.b32.xlu0 %v451_v1, %s644_s6  ;;  %v454_v4 = vld [vmem:[%s195_s5 + $0xa] sm:$0xff]  ;;  %p549_p12 = scmp.ne.s32.totalorder %s547_s30, %s548_s4  ;;  %p554_p2 = scmp.lt.s32.totalorder %s552_s8, %s548_s4 }
  0x1d   : > { %219 = vrot.lane.b32.xlu1 %v453_v2, %s645_s7  ;;  %v199_v6 = vld [vmem:[%s195_s5] sm:$0xff]  ;;  %v200_v11 = vld [vmem:[%s195_s5 + $0x8] sm:$0xff] }
  0x1e   : > { %p550_p13 = pnand %p549_p12, %p707_p4  ;;  %p555_p3 = por %p554_p2, %p553_p1 }
  0x20   : > { %p551_p0 = pneg %p550_p13 }
  0x22   : > { %p556_p5 = pnand %p555_p3, %p551_p0 }
  0x24   : > { %213 = vrot.lane.b32.xlu0 %v452_v3, %s644_s6 }
  0x25   : > { %221 = vrot.lane.b32.xlu1 %v454_v4, %s645_s7 }
  0x8e   : > { %v212_v7 = vpop.permute.xlu0 %211 }
  0x8f   : > { %v220_v8 = vpop.permute.xlu1 %219  ;;  %v226_v9 = vsel %vm225_vm1, %v199_v6, %v212_v7 }
  0x90   : > { %v229_v10 = vsel %vm228_vm2, %v226_v9, %v220_v8 }
  0x91   : > { %456 = vmatmul.msk.f32.vlgmr.msra.gmra.mxu0 %vm233_vm3, %v229_v10 }
  0x96   : > { %v214_v12 = vpop.permute.xlu0 %213 }
  0x97   : > { %v222_v13 = vpop.permute.xlu1 %221  ;;  %v227_v14 = vsel %vm225_vm1, %v200_v11, %v214_v12 }
  0x98   : > { %v230_v15 = vsel %vm228_vm2, %v227_v14, %v222_v13 }
  0x99   : > { %457 = vmatmul.msk.f32.vlgmr.msra.gmra.mxu1 %vm233_vm3, %v230_v15 }
 0x10e   : > { %v261_v16 = vpop.f32.mrf.mxu0 }
 0x10f   : > { %267 = vst [vmem:[%s183_s19] sm:$0xff] %v261_v16  ;;  %v276_v18 = vmul.f32 %v261_v16, %v261_v16 }
 0x116   : > { %v264_v17 = vpop.f32.mrf.mxu1 }
 0x117   : > { %268 = vst [vmem:[%s183_s19 + $0x8] sm:$0xff] %v264_v17  ;;  %v269_v19 = vadd.f32 %v264_v17, %v261_v16  ;;  %v277_v20 = vmul.f32 %v264_v17, %v264_v17 }
 0x118   : > { %559 = shalt.err (!%p556_p5)
}
 0x119   : > { %s646_s18 = smov 128   ;;  %v270_v21 = vrot.slane %v269_v19, 4  ;;  %v278_v22 = vadd.f32 %v277_v20, %v276_v18  ;;  %s449_s19 = sshll.u32 %s736_s10, 3  ;;  %vm285_vm4 = vcmask 1040384   ;;  %vm287_vm5 = vcmask 1041408  }
 0x11a   : > { %469 = dma.vmem_to_hbm [thread:$0]  (%p707_p4), %s311_s27, 256, %s313_s28, %s291_s29, %s646_s18, %s646_s18, %s645_s7  }
 0x11b   : > { %v271_v23 = vadd.f32 %v270_v21, %v269_v19  ;;  %v279_v24 = vrot.slane %v278_v22, 4  ;;  %s462_s21 = sshll.u32 %s634_s15, 3  ;;  %s190_s7 = scalar_lea.vmem [#allocation4], %s449_s19 }
 0x11c   : > { %s326_s30 = scalar_lea.hbm %s796_s3, %s462_s21  ;;  %s328_s27 = sshll.u32 %s190_s7, 4  ;;  %s329_s27 = int_to_ptr.vmem [resolvable:$true] %s328_s27 }
 0x11d   : > { %v272_v25 = vrot.slane %v271_v23, 2  ;;  %v280_v26 = vadd.f32 %v279_v24, %v278_v22  ;;  %s330_s28 = sshll.u32 %s326_s30, 4  ;;  %s296_s15 = scalar_lea.sflag [#allocation5], %s736_s10  ;;  %s331_s28 = int_to_ptr.hbm [resolvable:$true] %s330_s28 }
 0x11e   : > { %s574_s29 = sshra.s32 %s331_s28, 4  ;;  %s580_s8 = scalar_lea.hbm %s796_s3, 16  ;;  %s575_s29 = int_to_ptr.hbm [resolvable:$true] %s574_s29 }
 0x11f   : > { %v273_v27 = vadd.f32 %v272_v25, %v271_v23  ;;  %v281_v28 = vrot.slane %v280_v26, 2  ;;  %s576_s4 = scalar_lea.hbm %s575_s29, 8  ;;  %p581_p10 = scmp.lt.s32.totalorder %s575_s29, %s796_s3 }
 0x120   : > { %p577_p6 = scmp.ne.s32.totalorder %s575_s29, %s576_s4  ;;  %p582_p11 = scmp.lt.s32.totalorder %s580_s8, %s576_s4 }
 0x121   : > { %v274_v29 = vrot.slane %v273_v27, 1  ;;  %v282_v30 = vadd.f32 %v281_v28, %v280_v26 }
 0x122   : > { %p578_p7 = pnand %p577_p6, %p707_p4  ;;  %p583_p12 = por %p582_p11, %p581_p10 }
 0x123   : > { %v283_v31 = vrot.slane %v282_v30, 1  ;;  %v275_v32 = vadd.f32 %v274_v29, %v273_v27 }
 0x124   : > { %p579_p9 = pneg %p578_p7 }
 0x125   : > { %v284_v33 = vadd.f32 %v283_v31, %v282_v30 }
 0x126   : > { %p584_p13 = pnand %p583_p12, %p579_p9 }
 0x127   : > { %v286_v34 = vsel %vm285_vm4, %v275_v32, %v284_v33 }
 0x128   : > { %v288_v35 = vsel %vm287_vm5, %v286_v34, 0.0 }
 0x129   : > { %289 = vst [vmem:[%s190_s7] sm:$0xff] %v288_v35 }
 0x12a   : > { %587 = shalt.err (!%p584_p13)
}
 0x12b   : > { %470 = dma.vmem_to_hbm [thread:$0]  (%p707_p4), %s329_s27, 128, %s331_s28, %s296_s15  }
 0x12c PF: > { %p480_p0 = scmp.ge.s32.totalorder %s642_s17, 2  ;;  %s342_s10 = sand.u32 1, %s622_s12  }
 0x12d   : > { %s343_s18 = scalar_lea.sflag [#allocation3], %s342_s10 }
 0x12e   : > { %p474_p1 = pnand %p480_p0, %p714_p8 }
 0x130   : > { %p475_p2 = pneg %p474_p1 }
 0x132   : > { %613 = dma.done.wait (%p475_p2), %s343_s18, 256  }
 0x133   : > { %615 = vsyncadd (%p475_p2), %s343_s18, 4294967040  ;;  %s353_s19 = scalar_lea.sflag [#allocation5], %s342_s10 }
 0x134   : > { %617 = dma.done.wait (%p475_p2), %s353_s19, 128  }
 0x135   : > { %619 = vsyncadd (%p475_p2), %s353_s19, 4294967168  ;;  %s20_s17 = sadd.s32 1, %s642_s17   ;;  %s799_s12 = smov %s626_s13 }
 0x136   : > { %p17_p3 = scmp.ge.s32.totalorder %s20_s17, 4   ;;  %s800_s13 = smov %s630_s14 }
 0x137   : > { %s801_s14 = smov %s720_s25  ;;  %s802_s15 = smov %s638_s16 }
 0x138   : > { %s803_s16 = smov %s805_s20  ;;  %19 = sbr.rel (!%p17_p3) target bundleno = 6 (0x6), region = 83 }
 0x13d   :  { %359 = vsyncpa [#allocation3], 1 }
 0x13e   :  { %361 = vsyncpa [#allocation3 + $0x1], 1 }
 0x13f   :  { %362 = vsyncpa [#allocation5], 1 }
 0x140   :  { %364 = vsyncpa [#allocation5 + $0x1], 1 }

</bundles_post_ra>
